<compile_context>
chip_gen: v7x
topology: tpu7x:2x2x1
jax: 0.10.0
libtpu: 0.0.40
codegen_flags: <defaults>
</compile_context>

<pallas_src>
import functools

import jax
import jax.numpy as jnp
from jax.experimental import pallas as pl
from jax.experimental.pallas import tpu as pltpu

LANES = 128
MAX_BLOCK_ROWS = 2048  # 2048 * 128 * 4B = 1 MiB per f32 input block


def _partial_sse_kernel(x_ref, t_ref, out_ref, *, n_rows, block_rows, needs_mask):
    """One grid step: per-lane partial sum of (x - t)^2 over this block's rows.

    Writes a (1, 1, 128) partial; no scalar accumulation, no cross-grid carry.
    """
    x = x_ref[...].astype(jnp.float32)
    t = t_ref[...].astype(jnp.float32)
    d = x - t

    if needs_mask:
        # Zero out rows past the end of the real array (OOB VMEM contents are
        # unspecified garbage); masking before the square also kills NaN/Inf.
        i = pl.program_id(0)
        row = jax.lax.broadcasted_iota(jnp.int32, (block_rows, LANES), 0)
        global_row = i * block_rows + row
        d = jnp.where(global_row < n_rows, d, jnp.float32(0.0))

    partial = jnp.sum(d * d, axis=0, keepdims=True)          # (1, 128)
    out_ref[...] = partial.reshape(1, 1, LANES)


@jax.jit
def my_loss(inp, target):
    """loss1 = mean((input - target)^2), computed with a Pallas TPU kernel."""
    assert inp.shape == target.shape, "my_loss expects matching shapes"
    n_elem = inp.size

    x = inp.reshape(-1)
    t = target.reshape(-1)

    # Only pad when numel is not a multiple of the 128-lane width (rare for
    # conv activations). Zero padding contributes nothing to the sum.
    if n_elem % LANES:
        pad = LANES - (n_elem % LANES)
        x = jnp.pad(x, (0, pad))
        t = jnp.pad(t, (0, pad))

    rows = x.shape[0] // LANES
    x2 = x.reshape(rows, LANES)
    t2 = t.reshape(rows, LANES)

    # Block sizing: as large as useful, clamped to the array, multiple of 8.
    block_rows = min(MAX_BLOCK_ROWS, pl.cdiv(rows, 8) * 8)
    num_blocks = pl.cdiv(rows, block_rows)
    needs_mask = (num_blocks * block_rows) != rows

    kernel = functools.partial(
        _partial_sse_kernel,
        n_rows=rows,
        block_rows=block_rows,
        needs_mask=needs_mask,
    )

    partials = pl.pallas_call(
        kernel,
        out_shape=jax.ShapeDtypeStruct((num_blocks, 1, LANES), jnp.float32),
        grid_spec=pltpu.PrefetchScalarGridSpec(
            num_scalar_prefetch=0,
            grid=(num_blocks,),
            in_specs=[
                pl.BlockSpec((block_rows, LANES), lambda i: (i, 0)),
                pl.BlockSpec((block_rows, LANES), lambda i: (i, 0)),
            ],
            out_specs=pl.BlockSpec((1, 1, LANES), lambda i: (i, 0, 0)),
        ),
        compiler_params=pltpu.CompilerParams(
            # Per-block partial outputs -> grid axis is embarrassingly parallel
            # (lets both TensorCores run on v7x; harmless on v5e/v6e).
            dimension_semantics=("parallel",),
        ),
    )(x2, t2)

    # Tiny final reduction + mean: cheap glue in plain JAX (also better f32
    # accuracy than a single serial scalar accumulator).
    loss1 = jnp.sum(partials) / jnp.float32(n_elem)

    # TODO(synk): `+ beta * contrastive_loss.InstanceLoss(0.5, device)(input, target)`
    # is omitted: `contrastive_loss` is an external, undefined dependency in the spec.
    return loss1.astype(jnp.float32)


if __name__ == "__main__":
    key = jax.random.PRNGKey(0)
    k1, k2 = jax.random.split(key)
    # Shapes consistent with a typical NCHW conv activation.
    x = jax.random.normal(k1, (2, 4, 16, 16), dtype=jnp.float32)
    y = jax.random.normal(k2, (2, 4, 16, 16), dtype=jnp.float32)

    out = my_loss(x, y)
    jax.block_until_ready(out)

    # Cross-check against plain JAX reference (loss1 term of the module).
    ref = jnp.mean((x - y) ** 2)
    assert jnp.allclose(out, ref, rtol=1e-6, atol=1e-6), (out, ref)
    print("KERNEL_OK")
</pallas_src>

<mosaic_0001>
module attributes {stable_mosaic.version = 11 : i64} {
  func.func @_partial_sse_kernel(%arg0: i32, %arg1: memref<16x128xf32, #tpu.memory_space<vmem>>, %arg2: memref<16x128xf32, #tpu.memory_space<vmem>>, %arg3: memref<1x1x128xf32, #tpu.memory_space<vmem>>) attributes {dimension_semantics = [#tpu.dimension_semantics<parallel>], iteration_bounds = array<i64: 1>, scalar_prefetch = 0 : i64, scratch_operands = 0 : i64, tpu.core_type = #tpu.core_type<tc>, window_params = [{transform_indices = @transform_0, window_bounds = array<i64: 16, 128>}, {transform_indices = @transform_1, window_bounds = array<i64: 16, 128>}, {transform_indices = @transform_2, window_bounds = array<i64: 1, 1, 128>}]} {
    %c0 = arith.constant 0 : index
    %c0_0 = arith.constant 0 : index
    %0 = vector.load %arg1[%c0, %c0_0] : memref<16x128xf32, #tpu.memory_space<vmem>>, vector<16x128xf32>
    %c0_1 = arith.constant 0 : index
    %c0_2 = arith.constant 0 : index
    %1 = vector.load %arg2[%c0_1, %c0_2] : memref<16x128xf32, #tpu.memory_space<vmem>>, vector<16x128xf32>
    %2 = arith.subf %0, %1 : vector<16x128xf32>
    %3 = arith.mulf %2, %2 : vector<16x128xf32>
    %cst = arith.constant dense<0.000000e+00> : vector<128xf32>
    %4 = vector.multi_reduction <add>, %3, %cst [0] : vector<16x128xf32> to vector<128xf32>
    %5 = vector.shape_cast %4 : vector<128xf32> to vector<1x128xf32>
    %6 = vector.shape_cast %5 : vector<1x128xf32> to vector<1x1x128xf32>
    %c0_3 = arith.constant 0 : index
    %c0_4 = arith.constant 0 : index
    %c0_5 = arith.constant 0 : index
    %7 = vector.load %arg3[%c0_3, %c0_4, %c0_5] : memref<1x1x128xf32, #tpu.memory_space<vmem>>, vector<1x1x128xf32>
    tpu.vector_store %arg3[%c0_3, %c0_4, %c0_5], %6 {strides = array<i32>} : memref<1x1x128xf32, #tpu.memory_space<vmem>>, vector<1x1x128xf32>,
    return
  }
  func.func @transform_0(%arg0: i32) -> (i32, i32) {
    %c0_i32 = arith.constant 0 : i32
    %c0_i32_0 = arith.constant 0 : i32
    return %arg0, %c0_i32 : i32, i32
  }
  func.func @transform_1(%arg0: i32) -> (i32, i32) {
    %c0_i32 = arith.constant 0 : i32
    %c0_i32_0 = arith.constant 0 : i32
    return %arg0, %c0_i32 : i32, i32
  }
  func.func @transform_2(%arg0: i32) -> (i32, i32, i32) {
    %c0_i32 = arith.constant 0 : i32
    %c0_i32_0 = arith.constant 0 : i32
    %c0_i32_1 = arith.constant 0 : i32
    return %arg0, %c0_i32, %c0_i32_0 : i32, i32, i32
  }
}

</mosaic_0001>

<bundles_post_ra>
// kernel: my_loss.1
= control target key start
LH: loop header
LB: loop body
LE: loop exit
PB: predicated region body
PF: predicated region fallthrough
CT: control target
= control target key end

     0   :  { %s61_s0 = inlined_call_operand.vmem [shape: f32[16,128], index: 0, kind: input, shape index: {}]   ;;  %s62_s1 = inlined_call_operand.vmem [shape: f32[16,128], index: 1, kind: input, shape index: {}]   ;;  %s63_s2 = inlined_call_operand.vmem [shape: f32[1,1,128], index: 2, kind: output, shape index: {}]  }
   0x1   :  { %v11_v0 = vld [vmem:[%s61_s0] sm:$0xff]  ;;  %v12_v1 = vld [vmem:[%s61_s0 + $0x8] sm:$0xff] }
   0x2   :  { %v13_v2 = vld [vmem:[%s62_s1] sm:$0xff]  ;;  %v14_v3 = vld [vmem:[%s62_s1 + $0x8] sm:$0xff] }
   0x3   :  { %v15_v4 = vsub.f32 %v11_v0, %v13_v2  ;;  %v16_v5 = vsub.f32 %v12_v1, %v14_v3 }
   0x5   :  { %v17_v6 = vmul.f32 %v15_v4, %v15_v4  ;;  %v18_v7 = vmul.f32 %v16_v5, %v16_v5 }
   0x7   :  { %v19_v8 = vadd.f32 %v18_v7, %v17_v6 }
   0x9   :  { %v20_v9 = vrot.slane %v19_v8, 4 }
   0xb   :  { %v21_v10 = vadd.f32 %v20_v9, %v19_v8 }
   0xd   :  { %v22_v11 = vrot.slane %v21_v10, 2 }
   0xf   :  { %v23_v12 = vadd.f32 %v22_v11, %v21_v10 }
  0x11   :  { %v24_v13 = vrot.slane %v23_v12, 1 }
  0x13   :  { %v25_v14 = vadd.f32 %v24_v13, %v23_v12 }
  0x15   :  { %26 = vst [vmem:[%s63_s2] sm:$0x1] %v25_v14 }

</bundles_post_ra>
